<compile_context>
chip_gen: v5e
topology: v5e:2x2
jax: 0.10.0
libtpu: 0.0.40
codegen_flags: <defaults>
</compile_context>

<pallas_src>
import functools

import jax
import jax.numpy as jnp
from jax import lax
from jax.experimental import pallas as pl
from jax.experimental.pallas import tpu as pltpu


def _round_up(x, m):
    return ((x + m - 1) // m) * m


def _sdpa_kernel(q_ref, k_ref, v_ref, ctx_ref, attn_ref, *, scale, kv_valid,
                 use_bf16_matmul):
    # Refs are 2D thanks to pl.Squeezed() on the batch dim:
    #   q_ref: (TQ, D), k_ref: (Lk_pad, D), v_ref: (Lk_pad, Dv)
    #   ctx_ref: (TQ, Dv), attn_ref: (TQ, Lk_pad)
    q = q_ref[...]
    k = k_ref[...]
    v = v_ref[...]

    # Fold scalar scale into q (TQ*D multiplies instead of TQ*Lk on the scores).
    # NOTE: `if scale:` truthiness deliberately mirrors the torch reference, so
    # scale=0.0 (or None) means "no scaling".
    if scale:
        q = q * jnp.asarray(scale, dtype=q.dtype)

    if use_bf16_matmul and q.dtype == jnp.float32:
        # v5e's MXU is bf16-only; bf16 operands + f32 accumulation restore full
        # MXU rate (tiny numeric divergence, gated behind a flag).
        q = q.astype(jnp.bfloat16)
        k = k.astype(jnp.bfloat16)

    # scores = q @ k^T via dot_general contracting the last dim of both
    # operands -- no explicit (Lk, D) transpose, MXU f32 accumulation.
    s = lax.dot_general(
        q, k,
        dimension_numbers=(((1,), (1,)), ((), ())),
        preferred_element_type=jnp.float32,
    )

    # Mask key columns that only exist because Lk was padded to a lane-dense
    # multiple of 128: -inf -> exactly zero weight after softmax.
    lk_block = s.shape[-1]
    if kv_valid < lk_block:
        col = lax.broadcasted_iota(jnp.int32, s.shape, 1)
        s = jnp.where(col < kv_valid, s, -jnp.inf)

    # TODO(synk): attn_mask (masked_fill_(-inf)) path not implemented; kernel is
    # only valid for attn_mask=None, matching the reference call.

    # Numerically-stable softmax over the key axis (torch Softmax(dim=2)).
    m = jnp.max(s, axis=-1, keepdims=True)
    e = jnp.exp(s - m)
    denom = jnp.sum(e, axis=-1, keepdims=True)
    # EUP reciprocal (free slot) + one Newton-Raphson step on the (TQ, 1)
    # denominator -> near-exact 1/x at ~zero VALU cost.
    inv = pl.reciprocal(denom, approx=True)
    inv = inv * (2.0 - denom * inv)
    p = e * inv

    # attention_dropout = 0.0 -> dropout is identity (no-op).

    pv_dtype = (jnp.bfloat16 if (use_bf16_matmul and v.dtype == jnp.float32)
                else v.dtype)
    ctx = jnp.dot(p.astype(pv_dtype), v.astype(pv_dtype),
                  preferred_element_type=jnp.float32)

    attn_ref[...] = p.astype(attn_ref.dtype)
    ctx_ref[...] = ctx.astype(ctx_ref.dtype)


def _vmem_per_step_bytes(tq, lk, d, dv, itemsize, attn_itemsize, kv_bufs):
    """Conservative per-grid-step VMEM estimate."""
    q_blk = 2 * itemsize * tq * d                     # double-buffered q tile
    kv_blk = kv_bufs * itemsize * lk * (d + dv)       # K/V tiles
    ctx_blk = 2 * itemsize * tq * dv                  # double-buffered ctx tile
    attn_blk = 2 * attn_itemsize * tq * lk            # double-buffered attn tile
    f32_tmp = 4 * (4 * tq * lk + tq * dv)             # s/e/p (+slack) + f32 ctx
    return q_blk + kv_blk + ctx_blk + attn_blk + f32_tmp


def _pick_query_tile(lq, lk, d, dv, itemsize, attn_itemsize, budget, kv_bufs):
    """Largest query tile (multiple of 8) whose working set fits the budget."""
    lq8 = _round_up(max(lq, 1), 8)
    candidates = [t for t in (512, 384, 256, 128, 64, 32, 16, 8) if t <= lq8] or [lq8]
    for tq in candidates:
        if _vmem_per_step_bytes(tq, lk, d, dv, itemsize, attn_itemsize,
                                kv_bufs) <= budget:
            return tq
    # TODO(synk): for very long Lk, even TQ=8 with whole-Lk-resident K/V
    # overshoots VMEM; the fix is an Lk-tiled two-pass kernel (pass 1 row
    # max/sum of QK^T, pass 2 normalized attn writeback + ctx accumulation).
    return candidates[-1]


def scaled_dot_product_attention(q, k, v, scale=None, attn_mask=None,
                                 use_bf16_matmul=False):
    """q: (B, Lq, D), k: (B, Lk, D), v: (B, Lk, Dv) -> (context, attention)."""
    assert attn_mask is None, "attn_mask path not implemented (reference uses None)"
    B, Lq, D = q.shape
    Bk, Lk, Dk = k.shape
    Bv, Lkv, Dv = v.shape
    assert Dk == D and Bk == B and Bv == B and Lkv == Lk

    itemsize = jnp.dtype(q.dtype).itemsize
    attn_dtype = q.dtype  # emit attention weights in the input dtype
    attn_itemsize = jnp.dtype(attn_dtype).itemsize

    # Generation-aware VMEM ceiling: ~62.5% of physical capacity
    # (~40 MiB on v7x's 64 MiB, ~80 MiB on v5e/v6e's 128 MiB).
    try:
        vmem_cap = int(pltpu.get_tpu_info().vmem_capacity_bytes)
    except Exception:
        vmem_cap = 128 << 20
    vmem_ceiling = (vmem_cap * 5) // 8

    # Lane-dense attention writeback: pad the key axis to a multiple of 128
    # when it is large enough to matter (unmasked vst instead of vst.msk).
    if Lk > 128 and Lk % 128 != 0:
        lk_pad = _round_up(Lk, 128)
    else:
        lk_pad = Lk

    # K/V blocks are constant across the inner query axis; single-buffer them
    # when their double-buffered footprint is a meaningful slice of the VMEM
    # ceiling -- the reclaimed space buys a larger TQ.
    kv_bytes_2buf = 2 * itemsize * lk_pad * (D + Dv)
    single_buffer_kv = kv_bytes_2buf > vmem_ceiling // 8
    kv_bufs = 1 if single_buffer_kv else 2

    # VMEM-aware query tile (80% of the ceiling as tile-selection headroom).
    tile_budget = (vmem_ceiling * 4) // 5
    tq = _pick_query_tile(Lq, lk_pad, D, Dv, itemsize, attn_itemsize,
                          tile_budget, kv_bufs)
    lq_pad = _round_up(Lq, tq)
    n_q = lq_pad // tq
    if n_q <= 1:
        # Single-buffering only pays off when the query axis is actually tiled.
        single_buffer_kv = False
        kv_bufs = 2

    # Pad inputs with zeros; padded query rows are sliced off afterwards and
    # padded key columns are masked to -inf in-kernel (softmax unchanged).
    if lq_pad != Lq:
        q = jnp.pad(q, ((0, 0), (0, lq_pad - Lq), (0, 0)))
    if lk_pad != Lk:
        k = jnp.pad(k, ((0, 0), (0, lk_pad - Lk), (0, 0)))
        v = jnp.pad(v, ((0, 0), (0, lk_pad - Lk), (0, 0)))

    kernel = functools.partial(_sdpa_kernel, scale=scale, kv_valid=Lk,
                               use_bf16_matmul=use_bf16_matmul)

    out_shapes = (
        jax.ShapeDtypeStruct((B, lq_pad, Dv), q.dtype),        # context
        jax.ShapeDtypeStruct((B, lq_pad, lk_pad), attn_dtype),  # attention
    )

    per_step = _vmem_per_step_bytes(tq, lk_pad, D, Dv, itemsize, attn_itemsize,
                                    kv_bufs)
    vmem_budget = int(min(max(2 * per_step, 16 << 20), vmem_ceiling))

    flops = 2 * B * lq_pad * lk_pad * (D + Dv)
    bytes_accessed = (itemsize * B * (lq_pad * D + lk_pad * (D + Dv) + lq_pad * Dv)
                      + attn_itemsize * B * lq_pad * lk_pad)
    cost = pl.CostEstimate(flops=flops, transcendentals=B * lq_pad * lk_pad,
                           bytes_accessed=bytes_accessed)

    if single_buffer_kv:
        k_spec = pl.BlockSpec((pl.Squeezed(), lk_pad, D), lambda b, i: (b, 0, 0),
                              pipeline_mode=pl.Buffered(1))
        v_spec = pl.BlockSpec((pl.Squeezed(), lk_pad, Dv), lambda b, i: (b, 0, 0),
                              pipeline_mode=pl.Buffered(1))
    else:
        k_spec = pl.BlockSpec((pl.Squeezed(), lk_pad, D), lambda b, i: (b, 0, 0))
        v_spec = pl.BlockSpec((pl.Squeezed(), lk_pad, Dv), lambda b, i: (b, 0, 0))

    ctx, attn = pl.pallas_call(
        kernel,
        out_shape=out_shapes,
        grid_spec=pltpu.PrefetchScalarGridSpec(
            num_scalar_prefetch=0,
            grid=(B, n_q),
            in_specs=[
                pl.BlockSpec((pl.Squeezed(), tq, D), lambda b, i: (b, i, 0)),
                k_spec,
                v_spec,
            ],
            out_specs=[
                pl.BlockSpec((pl.Squeezed(), tq, Dv), lambda b, i: (b, i, 0)),
                pl.BlockSpec((pl.Squeezed(), tq, lk_pad), lambda b, i: (b, i, 0)),
            ],
        ),
        compiler_params=pltpu.CompilerParams(
            dimension_semantics=("parallel", "parallel"),
            vmem_limit_bytes=vmem_budget,
        ),
        cost_estimate=cost,
    )(q, k, v)

    if lq_pad != Lq or lk_pad != Lk:
        ctx = ctx[:, :Lq, :]
        attn = attn[:, :Lq, :Lk]
    return ctx, attn


def _reference(q, k, v, scale=None):
    # Pure-JAX reference mirroring the PyTorch forward.
    attention = jnp.einsum("bqd,bkd->bqk", q, k)
    if scale:
        attention = attention * scale
    attention = jax.nn.softmax(attention, axis=2)
    context = jnp.einsum("bqk,bkd->bqd", attention, v)
    return context, attention


if __name__ == "__main__":
    # Case 1: small, module-consistent shapes (B=2, Lq=Lk=8, D=32).
    kq, kk, kv = jax.random.split(jax.random.PRNGKey(0), 3)
    B, Lq, Lk, D = 2, 8, 8, 32
    q = jax.random.normal(kq, (B, Lq, D), dtype=jnp.float32)
    k = jax.random.normal(kk, (B, Lk, D), dtype=jnp.float32)
    v = jax.random.normal(kv, (B, Lk, D), dtype=jnp.float32)
    scale = 1.0 / (D ** 0.5)

    ctx, attn = scaled_dot_product_attention(q, k, v, scale=scale)
    jax.block_until_ready((ctx, attn))
    ctx_ref, attn_ref = _reference(q, k, v, scale=scale)
    assert jnp.allclose(ctx, ctx_ref, atol=1e-4, rtol=1e-4), "context mismatch (1)"
    assert jnp.allclose(attn, attn_ref, atol=1e-5, rtol=1e-5), "attention mismatch (1)"

    # Case 2: awkward lengths -> exercises query-axis padding and the
    # lane-dense key-axis padding + in-kernel -inf masking path.
    kq2, kk2, kv2 = jax.random.split(jax.random.PRNGKey(1), 3)
    B2, Lq2, Lk2, D2, Dv2 = 2, 20, 200, 32, 32
    q2 = jax.random.normal(kq2, (B2, Lq2, D2), dtype=jnp.float32)
    k2 = jax.random.normal(kk2, (B2, Lk2, D2), dtype=jnp.float32)
    v2 = jax.random.normal(kv2, (B2, Lk2, Dv2), dtype=jnp.float32)

    ctx2, attn2 = scaled_dot_product_attention(q2, k2, v2, scale=None)
    jax.block_until_ready((ctx2, attn2))
    ctx2_ref, attn2_ref = _reference(q2, k2, v2, scale=None)
    assert jnp.allclose(ctx2, ctx2_ref, atol=1e-4, rtol=1e-4), "context mismatch (2)"
    assert jnp.allclose(attn2, attn2_ref, atol=1e-5, rtol=1e-5), "attention mismatch (2)"

    print("KERNEL_OK")
</pallas_src>

<mosaic_0001>
module attributes {stable_mosaic.version = 11 : i64} {
  func.func @_sdpa_kernel(%arg0: i32, %arg1: i32, %arg2: memref<1x8x32xf32, #tpu.memory_space<vmem>>, %arg3: memref<1x8x32xf32, #tpu.memory_space<vmem>>, %arg4: memref<1x8x32xf32, #tpu.memory_space<vmem>>, %arg5: memref<1x8x32xf32, #tpu.memory_space<vmem>>, %arg6: memref<1x8x8xf32, #tpu.memory_space<vmem>>) attributes {dimension_semantics = [#tpu.dimension_semantics<parallel>, #tpu.dimension_semantics<parallel>], iteration_bounds = array<i64: 2, 1>, scalar_prefetch = 0 : i64, scratch_operands = 0 : i64, tpu.core_type = #tpu.core_type<tc>, window_params = [{transform_indices = @transform_0, window_bounds = array<i64: 1, 8, 32>}, {transform_indices = @transform_1, window_bounds = array<i64: 1, 8, 32>}, {transform_indices = @transform_2, window_bounds = array<i64: 1, 8, 32>}, {transform_indices = @transform_3, window_bounds = array<i64: 1, 8, 32>}, {transform_indices = @transform_4, window_bounds = array<i64: 1, 8, 8>}]} {
    %c0 = arith.constant 0 : index
    %c0_0 = arith.constant 0 : index
    %c0_1 = arith.constant 0 : index
    %0 = vector.load %arg2[%c0, %c0_0, %c0_1] : memref<1x8x32xf32, #tpu.memory_space<vmem>>, vector<1x8x32xf32>
    %1 = vector.shape_cast %0 : vector<1x8x32xf32> to vector<8x32xf32>
    %c0_2 = arith.constant 0 : index
    %c0_3 = arith.constant 0 : index
    %c0_4 = arith.constant 0 : index
    %2 = vector.load %arg3[%c0_2, %c0_3, %c0_4] : memref<1x8x32xf32, #tpu.memory_space<vmem>>, vector<1x8x32xf32>
    %3 = vector.shape_cast %2 : vector<1x8x32xf32> to vector<8x32xf32>
    %c0_5 = arith.constant 0 : index
    %c0_6 = arith.constant 0 : index
    %c0_7 = arith.constant 0 : index
    %4 = vector.load %arg4[%c0_5, %c0_6, %c0_7] : memref<1x8x32xf32, #tpu.memory_space<vmem>>, vector<1x8x32xf32>
    %5 = vector.shape_cast %4 : vector<1x8x32xf32> to vector<8x32xf32>
    %cst = arith.constant 0.176776692 : f32
    %6 = vector.broadcast %cst : f32 to vector<8x32xf32>
    %7 = arith.mulf %1, %6 : vector<8x32xf32>
    %cst_8 = arith.constant dense<0.000000e+00> : vector<8x8xf32>
    %8 = tpu.matmul %7, %3, %cst_8 {dimension_numbers = #tpu.dot_dimension_numbers<[1], [1], [0], [0], [0, 0, 1, 0], [], []>} : vector<8x32xf32>, vector<8x32xf32>, vector<8x8xf32> -> vector<8x8xf32>
    %cst_9 = arith.constant dense<0xFF800000> : vector<8xf32>
    %9 = vector.multi_reduction <maximumf>, %8, %cst_9 [1] : vector<8x8xf32> to vector<8xf32>
    %10 = vector.shape_cast %9 : vector<8xf32> to vector<8x1xf32>
    %11 = vector.broadcast %10 : vector<8x1xf32> to vector<8x8xf32>
    %12 = arith.subf %8, %11 : vector<8x8xf32>
    %13 = math.exp %12 : vector<8x8xf32>
    %cst_10 = arith.constant dense<0.000000e+00> : vector<8xf32>
    %14 = vector.multi_reduction <add>, %13, %cst_10 [1] : vector<8x8xf32> to vector<8xf32>
    %15 = vector.shape_cast %14 : vector<8xf32> to vector<8x1xf32>
    %16 = tpu.reciprocal %15 {approx = true} : vector<8x1xf32> -> vector<8x1xf32>
    %17 = arith.mulf %15, %16 : vector<8x1xf32>
    %cst_11 = arith.constant 2.000000e+00 : f32
    %18 = vector.broadcast %cst_11 : f32 to vector<8x1xf32>
    %19 = arith.subf %18, %17 : vector<8x1xf32>
    %20 = arith.mulf %16, %19 : vector<8x1xf32>
    %21 = vector.broadcast %20 : vector<8x1xf32> to vector<8x8xf32>
    %22 = arith.mulf %13, %21 : vector<8x8xf32>
    %cst_12 = arith.constant dense<0.000000e+00> : vector<8x32xf32>
    %23 = tpu.matmul %22, %5, %cst_12 {dimension_numbers = #tpu.dot_dimension_numbers<[1], [0], [0], [1], [0, 0, 1, 1], [], []>} : vector<8x8xf32>, vector<8x32xf32>, vector<8x32xf32> -> vector<8x32xf32>
    %c0_13 = arith.constant 0 : index
    %c0_14 = arith.constant 0 : index
    %c0_15 = arith.constant 0 : index
    %24 = vector.load %arg6[%c0_13, %c0_14, %c0_15] : memref<1x8x8xf32, #tpu.memory_space<vmem>>, vector<1x8x8xf32>
    %25 = vector.shape_cast %24 : vector<1x8x8xf32> to vector<8x8xf32>
    %26 = vector.shape_cast %22 : vector<8x8xf32> to vector<1x8x8xf32>
    tpu.vector_store %arg6[%c0_13, %c0_14, %c0_15], %26 {strides = array<i32>} : memref<1x8x8xf32, #tpu.memory_space<vmem>>, vector<1x8x8xf32>,
    %c0_16 = arith.constant 0 : index
    %c0_17 = arith.constant 0 : index
    %c0_18 = arith.constant 0 : index
    %27 = vector.load %arg5[%c0_16, %c0_17, %c0_18] : memref<1x8x32xf32, #tpu.memory_space<vmem>>, vector<1x8x32xf32>
    %28 = vector.shape_cast %27 : vector<1x8x32xf32> to vector<8x32xf32>
    %29 = vector.shape_cast %23 : vector<8x32xf32> to vector<1x8x32xf32>
    tpu.vector_store %arg5[%c0_16, %c0_17, %c0_18], %29 {strides = array<i32>} : memref<1x8x32xf32, #tpu.memory_space<vmem>>, vector<1x8x32xf32>,
    return
  }
  func.func @transform_0(%arg0: i32, %arg1: i32) -> (i32, i32, i32) {
    %c0_i32 = arith.constant 0 : i32
    %c0_i32_0 = arith.constant 0 : i32
    return %arg0, %arg1, %c0_i32 : i32, i32, i32
  }
  func.func @transform_1(%arg0: i32, %arg1: i32) -> (i32, i32, i32) {
    %c0_i32 = arith.constant 0 : i32
    %c0_i32_0 = arith.constant 0 : i32
    %c0_i32_1 = arith.constant 0 : i32
    return %arg0, %c0_i32, %c0_i32_0 : i32, i32, i32
  }
  func.func @transform_2(%arg0: i32, %arg1: i32) -> (i32, i32, i32) {
    %c0_i32 = arith.constant 0 : i32
    %c0_i32_0 = arith.constant 0 : i32
    %c0_i32_1 = arith.constant 0 : i32
    return %arg0, %c0_i32, %c0_i32_0 : i32, i32, i32
  }
  func.func @transform_3(%arg0: i32, %arg1: i32) -> (i32, i32, i32) {
    %c0_i32 = arith.constant 0 : i32
    %c0_i32_0 = arith.constant 0 : i32
    return %arg0, %arg1, %c0_i32 : i32, i32, i32
  }
  func.func @transform_4(%arg0: i32, %arg1: i32) -> (i32, i32, i32) {
    %c0_i32 = arith.constant 0 : i32
    %c0_i32_0 = arith.constant 0 : i32
    return %arg0, %arg1, %c0_i32 : i32, i32, i32
  }
}

</mosaic_0001>

<bundles_post_ra>
// kernel: tpu_custom_call.1
= control target key start
LH: loop header
LB: loop body
LE: loop exit
PB: predicated region body
PF: predicated region fallthrough
CT: control target
= control target key end

     0   :  { %s1106_s0 = inlined_call_operand.hbm [shape: f32[2,8,32], index: 0, kind: input, shape index: {}]   ;;  %s1107_s1 = inlined_call_operand.hbm [shape: f32[2,8,32], index: 1, kind: input, shape index: {}]   ;;  %s1108_s2 = inlined_call_operand.hbm [shape: f32[2,8,32], index: 2, kind: input, shape index: {}]   ;;  %s1109_s3 = inlined_call_operand.hbm [shape: f32[2,8,32], index: 3, kind: output, shape index: {0}]   ;;  %s1110_s4 = inlined_call_operand.hbm [shape: f32[2,8,8], index: 4, kind: output, shape index: {1}]  }
   0x1   :  { %1114 = sst [smem:[#allocation19_spill]] %s1107_s1 }
   0x2   :  { %10 = vsyncpa [#allocation3], 0 }
   0x3   :  { %12 = vsyncpa [#allocation3 + $0x1], 0 }
   0x4   :  { %13 = vsyncpa [#allocation6], 0 }
   0x5   :  { %15 = vsyncpa [#allocation6 + $0x1], 0 }
   0x6   :  { %16 = vsyncpa [#allocation4], 0 }
   0x7   :  { %18 = vsyncpa [#allocation4 + $0x1], 0 }
   0x8   :  { %19 = vsyncpa [#allocation10], 0 }
   0x9   :  { %21 = vsyncpa [#allocation10 + $0x1], 0  ;;  %s926_s15 = smov 0   ;;  %s928_s16 = smov 0  }
   0xa   :  { %s930_s17 = smov 0   ;;  %s932_s18 = smov 0  }
   0xb   :  { %s934_s19 = smov 0   ;;  %s936_s20 = smov 0  }
   0xc LB: > { %1115 = sst [smem:[#allocation15_spill]] %s887_s17  ;;  %s957_s21 = sadd.s32 4294967295, %s899_s20   ;;  %s899_s20 = sphi %s936_s20, %s27_s20   ;;  %s895_s19 = sphi %s934_s19, %s1129_s19   ;;  %s891_s18 = sphi %s932_s18, %s1128_s18   ;;  %s887_s17 = sphi %s930_s17, %s1127_s17   ;;  %s883_s16 = sphi %s928_s16, %s1131_s16   ;;  %s879_s15 = sphi %s926_s15, %s1130_s15  }
   0xd   : > { %1116 = sst [smem:[#allocation16_spill]] %s895_s19  ;;  %s586_s22 = sadd.s32 4294967294, %s899_s20  }
   0xe   : > { %s39_s23 = sadd.s32 1, %s895_s19  ;;  %s48_s24 = sadd.s32 1, %s887_s17 }
   0xf   : > { %p41_p0 = scmp.ge.s32.totalorder %s39_s23, 2  ;;  %p55_p1 = scmp.ne.s32.totalorder %s887_s17, %s883_s16 }
  0x10   : > { %p56_p2 = scmp.eq.s32.totalorder %s899_s20, 0  ;;  %p61_p3 = scmp.ne.s32.totalorder %s883_s16, %s879_s15 }
  0x11   : > { %s1133_s23 = smov (%p41_p0, %s39_s23), 0  ;;  %p62_p5 = scmp.eq.s32.totalorder %s957_s21, 0 }
  0x12   : > { %1117 = sst [smem:[#allocation17_spill]] %s1133_s23  ;;  %p969_p4 = por %p56_p2, %p55_p1 }
  0x13   : > { %s43_s26 = ssub.s32 %s895_s19, %s1133_s23  ;;  %p139_p6 = scmp.eq.s32.totalorder %s957_s21, 1 }
  0x14   : > { %p46_p7 = scmp.eq.s32.totalorder %s43_s26, 0  ;;  %p977_p8 = por %p62_p5, %p61_p3 }
  0x15   : > { %p981_p9 = por %p139_p6, %p55_p1  ;;  %p145_p10 = scmp.eq.s32.totalorder %s586_s22, 1 }
  0x16   : > { %s986_s29 = scalar_select %p46_p7, %s887_s17, %s48_s24  }
  0x17   : > { %p988_p11 = por %p145_p10, %p61_p3  ;;  %p588_p12 = scmp.ge.s32.totalorder %s899_s20, 2 }
  0x18   : > { %1121 = sst [smem:[#allocation18_spill]] %s986_s29  ;;  %p637_p13 = scmp.lt.s32.totalorder %s899_s20, 2 }
  0x19   : > { %s193_s5 = sand.u32 1, %s887_s17   ;;  %s590_s7 = sshll.u32 %s895_s19, 3 }
  0x1a   : > { %s589_s6 = sshll.u32 %s193_s5, 3  ;;  %p998_p0 = pnand %p637_p13, %p969_p4 }
  0x1b   : > { %s213_s9 = sand.u32 1, %s899_s20   ;;  %s1124_s1 = sld [smem:[#allocation19_spill]] }
  0x1c   : > { %s217_s14 = scalar_lea.vmem [#allocation5], %s589_s6  ;;  %s214_s24 = scalar_lea.sflag [#allocation6], %s213_s9 }
  0x1d   : > { %s225_s22 = sshll.u32 %s217_s14, 4  ;;  %p595_p1 = scmp.ge.s32.totalorder %s899_s20, 1  ;;  %s226_s22 = int_to_ptr.vmem [resolvable:$true] %s225_s22 }
  0x1e   : > { %p249_p2 = scmp.lt.s32.totalorder %s899_s20, 3  ;;  %s202_s10 = scalar_lea.hbm %s1106_s0, %s590_s7 }
  0x1f   : > { %s204_s11 = sshll.u32 %s202_s10, 4  ;;  %s194_s14 = scalar_lea.sflag [#allocation3], %s193_s5  ;;  %s205_s11 = int_to_ptr.hbm [resolvable:$true] %s204_s11 }
  0x20   : > { %p1010_p3 = pnand %p595_p1, %p249_p2  ;;  %s236_s29 = scalar_lea.vmem [#allocation7], %s589_s6 }
  0x21   : > { %s221_s12 = scalar_lea.hbm %s1124_s1, %s590_s7  ;;  %s244_s17 = sshll.u32 %s236_s29, 4  ;;  %s245_s17 = int_to_ptr.vmem [resolvable:$true] %s244_s17 }
  0x22   : > { %s223_s13 = sshll.u32 %s221_s12, 4  ;;  %s197_s12 = scalar_lea.vmem [#allocation2], %s589_s6  ;;  %s224_s13 = int_to_ptr.hbm [resolvable:$true] %s223_s13 }
  0x23   : > { %626 = dma.hbm_to_vmem [thread:$0]  (!%p998_p0), %s224_s13, 128, %s226_s22, %s214_s24  }
  0x24   : > { %s206_s1 = sshll.u32 %s197_s12, 4  ;;  %s240_s22 = scalar_lea.hbm %s1108_s2, %s590_s7  ;;  %s207_s1 = int_to_ptr.vmem [resolvable:$true] %s206_s1 }
  0x25   : > { %623 = dma.hbm_to_vmem [thread:$0]  (!%p998_p0), %s205_s11, 128, %s207_s1, %s194_s14  }
  0x26   : > { %s242_s19 = sshll.u32 %s240_s22, 4  ;;  %253 = sbr.rel (%p1010_p3) target bundleno = 566 (0x236), region = 32  ;;  %s243_s19 = int_to_ptr.hbm [resolvable:$true] %s242_s19 }
  0x27   : > { %629 = dma.hbm_to_vmem [thread:$0]  (!%p998_p0), %s243_s19, 128, %s245_s17, %s214_s24  }
  0x28   : > { %s1027_s23 = sand.u32 (!%p1010_p3), 1, %s883_s16  }
  0x29   : > { %s1030_s1 = sshll.u32 (!%p1010_p3), %s1027_s23, 3  ;;  %s256_s5 = scalar_lea.sflag (!%p1010_p3), [#allocation3], %s1027_s23 }
  0x2a   : > { %s259_s7 = scalar_lea.vmem (!%p1010_p3), [#allocation2], %s1030_s1 }
  0x2b   : > { %862 = dma.done.wait (%p977_p8), %s256_s5, 128  }
  0x2c   : > { %864 = vsyncadd (%p977_p8), %s256_s5, 4294967168  ;;  %s265_s17 = sand.u32 1, %s957_s21   ;;  %s269_s29 = scalar_lea.vmem [#allocation5], %s1030_s1 }
  0x2d   : > { %s266_s19 = scalar_lea.sflag [#allocation6], %s265_s17 }
  0x2e   : > { %866 = dma.done.wait (%p977_p8), %s266_s19, 256  }
  0x2f   : > { %868 = vsyncadd (%p977_p8), %s266_s19, 4294967040  ;;  %vm324_vm0 = vcmask 261120   ;;  %v321_v0 = vld [vmem:[%s269_s29] sm:$0xff]  ;;  %v320_v1 = vld [vmem:[%s259_s7] sm:$0xff]  ;;  %vm351_vm1 = vcmask 64512   ;;  %s279_s21 = scalar_lea.vmem [#allocation7], %s1030_s1 }
  0x30   : > { %601 = vmatpush.xpose.msk.msra.mxu0 %vm324_vm0, %v321_v0  ;;  %v323_v2 = vmul.f32 0.17677669, %v320_v1  ;;  %v322_v10 = vld [vmem:[%s279_s21] sm:$0xff]  ;;  %s606_s27 = sshll.u32 %s891_s18, 3  ;;  %s319_s25 = scalar_lea.vmem [#allocation9], %s1030_s1 }
  0x31   : > { %384 = vmatpush.msra.mxu1 %v322_v10  ;;  %s423_s24 = scalar_lea.hbm %s1110_s4, %s606_s27  ;;  %s425_s26 = sshll.u32 %s319_s25, 4  ;;  %s426_s26 = int_to_ptr.vmem [resolvable:$true] %s425_s26 }
  0x32   : > { %s427_s10 = sshll.u32 %s423_s24, 4  ;;  %s397_s11 = scalar_lea.sflag [#allocation10], %s1027_s23  ;;  %s428_s10 = int_to_ptr.hbm [resolvable:$true] %s427_s10 }
  0x33   : > { %602 = vmatmul.msk.f32.vlgmr.msra.gmra.mxu0 %vm324_vm0, %v323_v2  ;;  %s795_s12 = sshra.s32 %s428_s10, 4  ;;  %s801_s13 = scalar_lea.hbm %s1110_s4, 16  ;;  %s796_s12 = int_to_ptr.hbm [resolvable:$true] %s795_s12 }
  0x34   : > { %s797_s18 = scalar_lea.hbm %s796_s12, 8  ;;  %p802_p7 = scmp.lt.s32.totalorder %s796_s12, %s1110_s4 }
  0x35   : > { %p798_p4 = scmp.ne.s32.totalorder %s796_s12, %s797_s18  ;;  %p803_p8 = scmp.lt.s32.totalorder %s801_s13, %s797_s18 }
  0x37   : > { %p799_p5 = pnand %p798_p4, %p981_p9  ;;  %p804_p10 = por %p803_p8, %p802_p7 }
  0x39   : > { %p800_p6 = pneg %p799_p5 }
  0x3b   : > { %p805_p13 = pnand %p804_p10, %p800_p6 }
  0xb0   : > { %v348_v3 = vpop.f32.mrf.mxu0 }
  0xb1   : > { %v352_v4 = vsel %vm351_vm1, %v348_v3, -inf }
  0xb2   : > { %353 = vmax.xlane.f32.xlu0 %v352_v4 }
 0x125   : > { %v354_v5 = vpop.xlane.xlu0 %353 }
 0x126   : > { %v355_v6 = vsub.f32 %v348_v3, %v354_v5 }
 0x128   : > { %v356_v7 = vmul.f32 1.442695, %v355_v6 }
 0x12a   : > { %687 = vpow2.f32 %v356_v7 }
 0x130   : > { %v688_v8 = vpop.eup %687 }
 0x131   : > { %v358_v9 = vsel %vm351_vm1, %v688_v8, 0.0 }
 0x132   : > { %359 = vadd.xlane.f32.xlu0 %v358_v9 }
 0x1a5   : > { %v360_v11 = vpop.xlane.xlu0 %359 }
 0x1a6   : > { %689 = vrcp.f32 %v360_v11 }
 0x1ac   : > { %v690_v12 = vpop.eup %689 }
 0x1ad   : > { %v362_v13 = vmul.f32 %v690_v12, %v360_v11 }
 0x1af   : > { %v363_v14 = vsub.f32 2.0, %v362_v13 }
 0x1b1   : > { %v364_v15 = vmul.f32 %v690_v12, %v363_v14 }
 0x1b3   : > { %v365_v16 = vmul.f32 %v688_v8, %v364_v15 }
 0x1b5   : > { %603 = vmatmul.msk.f32.vlgmr.msra.gmra.mxu1 %vm351_vm1, %v365_v16  ;;  %389 = vst.msk [vmem:[%s319_s25] sm:$0xff] %vm351_vm1, %v365_v16 }
 0x1b6   : > { %808 = shalt.err (!%p805_p13)
}
 0x1b7   : > { %617 = dma.vmem_to_hbm [thread:$0]  (%p981_p9), %s426_s26, 128, %s428_s10, %s397_s11  }
 0x1b8   : > { %s408_s19 = scalar_lea.hbm %s1109_s3, %s606_s27  ;;  %s312_s29 = scalar_lea.vmem [#allocation8], %s1030_s1 }
 0x1b9   : > { %s410_s21 = sshll.u32 %s312_s29, 4  ;;  %s412_s6 = sshll.u32 %s408_s19, 4  ;;  %s411_s21 = int_to_ptr.vmem [resolvable:$true] %s410_s21  ;;  %s413_s6 = int_to_ptr.hbm [resolvable:$true] %s412_s6 }
 0x1ba   : > { %s392_s8 = scalar_lea.sflag [#allocation4], %s1027_s23  ;;  %s823_s24 = sshra.s32 %s413_s6, 4  ;;  %s824_s24 = int_to_ptr.hbm [resolvable:$true] %s823_s24 }
 0x1bb   : > { %s825_s25 = scalar_lea.hbm %s824_s24, 8  ;;  %s829_s27 = scalar_lea.hbm %s1109_s3, 16 }
 0x1bc   : > { %p826_p0 = scmp.ne.s32.totalorder %s824_s24, %s825_s25  ;;  %p830_p3 = scmp.lt.s32.totalorder %s824_s24, %s1109_s3 }
 0x1bd   : > { %p831_p4 = scmp.lt.s32.totalorder %s829_s27, %s825_s25 }
 0x1be   : > { %p827_p1 = pnand %p826_p0, %p981_p9 }
 0x1bf   : > { %p832_p5 = por %p831_p4, %p830_p3 }
 0x1c0   : > { %p828_p2 = pneg %p827_p1 }
 0x1c2   : > { %p833_p6 = pnand %p832_p5, %p828_p2 }
 0x232   : > { %v386_v17 = vpop.f32.mrf.mxu1 }
 0x233   : > { %390 = vst.msk [vmem:[%s312_s29] sm:$0xff] %vm324_vm0, %v386_v17 }
 0x234   : > { %836 = shalt.err (!%p833_p6)
}
 0x235   : > { %616 = dma.vmem_to_hbm [thread:$0]  (%p981_p9), %s411_s21, 128, %s413_s6, %s392_s8  }
 0x236 PF: > { %s439_s23 = sand.u32 1, %s879_s15   ;;  %p631_p7 = pnand %p588_p12, %p988_p11 }
 0x237   : > { %s440_s12 = scalar_lea.sflag [#allocation4], %s439_s23 }
 0x238   : > { %p632_p8 = pneg %p631_p7 }
 0x23a   : > { %870 = dma.done.wait (%p632_p8), %s440_s12, 128  }
 0x23b   : > { %872 = vsyncadd (%p632_p8), %s440_s12, 4294967168  ;;  %s450_s18 = scalar_lea.sflag [#allocation10], %s439_s23 }
 0x23c   : > { %874 = dma.done.wait (%p632_p8), %s450_s18, 128  }
 0x23d   : > { %876 = vsyncadd (%p632_p8), %s450_s18, 4294967168  ;;  %s27_s20 = sadd.s32 1, %s899_s20   ;;  %s1126_s28 = sld [smem:[#allocation15_spill]] }
 0x23e   : > { %p24_p10 = scmp.ge.s32.totalorder %s27_s20, 4   ;;  %s1127_s17 = sld [smem:[#allocation18_spill]] }
 0x23f   : > { %s1128_s18 = sld [smem:[#allocation16_spill]]  ;;  %s1130_s15 = smov %s883_s16 }
 0x240   : > { %s1129_s19 = sld [smem:[#allocation17_spill]]  ;;  %26 = sbr.rel (!%p24_p10) target bundleno = 12 (0xc), region = 118 }
 0x243   : > { %s1131_s16 = smov %s1126_s28 }
 0x245   :  { %456 = vsyncpa [#allocation3], 1 }
 0x246   :  { %458 = vsyncpa [#allocation3 + $0x1], 1 }
 0x247   :  { %459 = vsyncpa [#allocation6], 1 }
 0x248   :  { %461 = vsyncpa [#allocation6 + $0x1], 1 }
 0x249   :  { %462 = vsyncpa [#allocation4], 1 }
 0x24a   :  { %464 = vsyncpa [#allocation4 + $0x1], 1 }
 0x24b   :  { %465 = vsyncpa [#allocation10], 1 }
 0x24c   :  { %467 = vsyncpa [#allocation10 + $0x1], 1 }

</bundles_post_ra>
